<compile_context>
chip_gen: v7x
topology: tpu7x:2x2x1
jax: 0.10.0
libtpu: 0.0.40
codegen_flags: <defaults>
</compile_context>

<pallas_src>
import functools

import jax
import jax.numpy as jnp
from jax.experimental import pallas as pl
from jax.experimental.pallas import tpu as pltpu


def _discriminator_kernel(s_ref, c_ref, w1_ref, w2_ref, b_ref, o_ref):
    """One batch tile:  sigmoid(s @ W1 + c @ W2 + b), computed lane-dense.

    s_ref : (TM, Ds)  activations (VMEM, pipelined over the batch grid)
    c_ref : (TM, Dc)  activations (VMEM, pipelined over the batch grid)
    w1_ref: (1, Ds)   weight row (VMEM, resident across grid steps)
    w2_ref: (1, Dc)   weight row (VMEM, resident across grid steps)
    b_ref : (1, 1)    bias scalar (SMEM)
    o_ref : (1, TM)   lane-dense probabilities
    """
    s = s_ref[...].astype(jnp.float32)
    c = c_ref[...].astype(jnp.float32)

    # (1, D) x (TM, D), contracting the feature dim of BOTH operands -> (1, TM).
    # The result already lies along lanes, so there is no (TM, 1) column
    # intermediate and no transpose/relayout on the store path.
    dn = (((1,), (1,)), ((), ()))
    z = (
        jax.lax.dot_general(w1_ref[...], s, dn, preferred_element_type=jnp.float32)
        + jax.lax.dot_general(w2_ref[...], c, dn, preferred_element_type=jnp.float32)
        + b_ref[0, 0]
    )                                                  # (1, TM) f32
    o_ref[...] = jax.nn.sigmoid(z).astype(o_ref.dtype)


def _round_up(x, m):
    return (x + m - 1) // m * m


def _round_down(x, m):
    return x // m * m


def _vmem_capacity_bytes():
    """Per-core physical VMEM; conservative 64 MiB (v7x) fallback if unqueryable."""
    capacity = 64 * 1024 * 1024
    try:
        capacity = int(pltpu.get_tpu_info().vmem_capacity_bytes)
    except Exception:
        pass
    return capacity


@functools.partial(jax.jit, static_argnames=("block_rows",))
def subgraph_discriminator(subgraph_vec, context_vec, weight, bias, *, block_rows=8192):
    """Pallas TPU equivalent of SubgraphDiscriminator.forward.

    subgraph_vec: [B, Ds]   context_vec: [B, Dc]   (Ds + Dc == embed_dim)
    weight: [1, embed_dim]  (PyTorch nn.Linear layout)   bias: [1]
    returns: [B, 1]
    """
    B, Ds = subgraph_vec.shape
    Bc, Dc = context_vec.shape
    assert B == Bc
    assert weight.shape == (1, Ds + Dc)
    assert bias.shape == (1,)
    out_dtype = subgraph_vec.dtype

    # Split the Linear weight into per-input rows (eliminates the concat).
    w1 = weight[:, :Ds].astype(jnp.float32)            # (1, Ds)
    w2 = weight[:, Ds:].astype(jnp.float32)            # (1, Dc)
    b = bias.reshape(1, 1).astype(jnp.float32)

    # ---- batch-tile sizing -------------------------------------------------------
    # VMEM blocks are (8, 128)-tiled, so account for lane-padded feature widths and
    # for the in-kernel f32 working copies of both activation tiles.
    act_item = jnp.dtype(subgraph_vec.dtype).itemsize
    out_item = jnp.dtype(out_dtype).itemsize
    ds_pad = _round_up(Ds, 128)
    dc_pad = _round_up(Dc, 128)
    bytes_per_row = 2 * (ds_pad + dc_pad) * act_item + (ds_pad + dc_pad) * 4

    vmem_capacity = _vmem_capacity_bytes()
    vmem_budget = vmem_capacity // 2                    # leave half as headroom
    tm_cap = max(128, _round_down(vmem_budget // bytes_per_row, 128))
    tm = min(block_rows, tm_cap)

    if B <= tm and B < 256:
        # Single tile: block shapes equal the full arrays (no alignment constraint,
        # no padding needed, no wasted zero rows).
        TM = B
    else:
        # Multiple tiles: TM multiple of 128 (lane-aligned output blocks) and at
        # least 2 grid steps so v7x megacore uses both TensorCores.
        TM = min(tm, max(128, _round_down(B // 2, 128)))
    grid = pl.cdiv(B, TM)

    # Explicit VMEM limit derived from the actual block shapes (+ headroom).
    est_vmem = (
        _round_up(TM, 8) * bytes_per_row                # double-buffered act tiles + f32 copy
        + 2 * 8 * _round_up(TM, 128) * out_item         # output row buffers
        + 2 * 8 * (ds_pad + dc_pad) * 4                 # resident weight rows
        + (4 << 20)                                     # slack
    )
    vmem_limit = int(min(vmem_capacity, max(vmem_budget, est_vmem)))

    cost = pl.CostEstimate(
        flops=2 * B * (Ds + Dc),
        transcendentals=B,
        bytes_accessed=B * (Ds + Dc) * act_item + (Ds + Dc) * 4 + B * out_item,
    )

    out_row = pl.pallas_call(
        _discriminator_kernel,
        out_shape=jax.ShapeDtypeStruct((1, B), out_dtype),
        grid=(grid,),
        in_specs=[
            pl.BlockSpec((TM, Ds), lambda i: (i, 0)),   # pipelined over batch tiles
            pl.BlockSpec((TM, Dc), lambda i: (i, 0)),   # pipelined over batch tiles
            pl.BlockSpec((1, Ds), lambda i: (0, 0)),    # weight row, stays resident
            pl.BlockSpec((1, Dc), lambda i: (0, 0)),    # weight row, stays resident
            pl.BlockSpec(memory_space=pltpu.SMEM),      # bias scalar in SMEM
        ],
        out_specs=pl.BlockSpec((1, TM), lambda i: (0, i)),  # lane-dense output row
        compiler_params=pltpu.CompilerParams(
            dimension_semantics=("parallel",),          # shard batch tiles across TCs
            vmem_limit_bytes=vmem_limit,
        ),
        cost_estimate=cost,
    )(subgraph_vec, context_vec, w1, w2, b)

    return out_row[0, :B].reshape(B, 1)


if __name__ == "__main__":
    key = jax.random.PRNGKey(0)
    k_s, k_c, k_w, k_b = jax.random.split(key, 4)

    embed_dim = 32          # nn.Linear(in_features=embed_dim, out_features=1)
    half = embed_dim // 2   # cat([subgraph_vec, context_vec]) must equal embed_dim
    B = 10                  # not a multiple of 8 -> exercises the ragged/full-block path

    subgraph_vec = jax.random.normal(k_s, (B, half), dtype=jnp.float32)
    context_vec = jax.random.normal(k_c, (B, half), dtype=jnp.float32)

    # Deterministic parameters with shapes matching nn.Linear(embed_dim, 1).
    bound = 1.0 / float(embed_dim) ** 0.5
    weight = jax.random.uniform(k_w, (1, embed_dim), jnp.float32, -bound, bound)
    bias = jax.random.uniform(k_b, (1,), jnp.float32, -bound, bound)

    out = subgraph_discriminator(subgraph_vec, context_vec, weight, bias)
    out = jax.block_until_ready(out)

    # Pure-JAX reference (same math as the PyTorch forward).
    ref = jax.nn.sigmoid(
        jnp.concatenate([subgraph_vec, context_vec], axis=-1) @ weight.T + bias
    )
    assert out.shape == (B, 1)
    assert jnp.allclose(out, ref, atol=1e-5), "mismatch vs reference"

    print("KERNEL_OK")
</pallas_src>

<mosaic_0001>
module attributes {stable_mosaic.version = 11 : i64} {
  func.func @_discriminator_kernel(%arg0: i32, %arg1: memref<10x16xf32, #tpu.memory_space<vmem>>, %arg2: memref<10x16xf32, #tpu.memory_space<vmem>>, %arg3: memref<1x16xf32, #tpu.memory_space<vmem>>, %arg4: memref<1x16xf32, #tpu.memory_space<vmem>>, %arg5: memref<1x1xf32, #tpu.memory_space<smem>>, %arg6: memref<1x10xf32, #tpu.memory_space<vmem>>) attributes {dimension_semantics = [#tpu.dimension_semantics<parallel>], iteration_bounds = array<i64: 1>, scalar_prefetch = 0 : i64, scratch_operands = 0 : i64, tpu.core_type = #tpu.core_type<tc>, window_params = [{transform_indices = @transform_0, window_bounds = array<i64: 10, 16>}, {transform_indices = @transform_1, window_bounds = array<i64: 10, 16>}, {pipeline_mode = #tpu.pipeline_mode<synchronous>, transform_indices = @transform_2, window_bounds = array<i64: 1, 16>}, {pipeline_mode = #tpu.pipeline_mode<synchronous>, transform_indices = @transform_3, window_bounds = array<i64: 1, 16>}, {transform_indices = @transform_4, window_bounds = array<i64: 1, 1>}, {transform_indices = @transform_5, window_bounds = array<i64: 1, 10>}]} {
    %c0 = arith.constant 0 : index
    %c0_0 = arith.constant 0 : index
    %0 = vector.load %arg1[%c0, %c0_0] : memref<10x16xf32, #tpu.memory_space<vmem>>, vector<10x16xf32>
    %c0_1 = arith.constant 0 : index
    %c0_2 = arith.constant 0 : index
    %1 = vector.load %arg2[%c0_1, %c0_2] : memref<10x16xf32, #tpu.memory_space<vmem>>, vector<10x16xf32>
    %c0_3 = arith.constant 0 : index
    %c0_4 = arith.constant 0 : index
    %2 = vector.load %arg3[%c0_3, %c0_4] : memref<1x16xf32, #tpu.memory_space<vmem>>, vector<1x16xf32>
    %cst = arith.constant dense<0.000000e+00> : vector<1x10xf32>
    %3 = tpu.matmul %2, %0, %cst {dimension_numbers = #tpu.dot_dimension_numbers<[1], [1], [0], [0], [0, 0, 1, 0], [], []>} : vector<1x16xf32>, vector<10x16xf32>, vector<1x10xf32> -> vector<1x10xf32>
    %c0_5 = arith.constant 0 : index
    %c0_6 = arith.constant 0 : index
    %4 = vector.load %arg4[%c0_5, %c0_6] : memref<1x16xf32, #tpu.memory_space<vmem>>, vector<1x16xf32>
    %cst_7 = arith.constant dense<0.000000e+00> : vector<1x10xf32>
    %5 = tpu.matmul %4, %1, %cst_7 {dimension_numbers = #tpu.dot_dimension_numbers<[1], [1], [0], [0], [0, 0, 1, 0], [], []>} : vector<1x16xf32>, vector<10x16xf32>, vector<1x10xf32> -> vector<1x10xf32>
    %6 = arith.addf %3, %5 : vector<1x10xf32>
    %c0_8 = arith.constant 0 : index
    %c0_9 = arith.constant 0 : index
    %7 = memref.load %arg5[%c0_8, %c0_9] : memref<1x1xf32, #tpu.memory_space<smem>>
    %8 = vector.broadcast %7 : f32 to vector<1x10xf32>
    %9 = arith.addf %6, %8 : vector<1x10xf32>
    %10 = arith.negf %9 : vector<1x10xf32>
    %11 = math.exp %10 : vector<1x10xf32>
    %cst_10 = arith.constant 1.000000e+00 : f32
    %12 = vector.broadcast %cst_10 : f32 to vector<1x10xf32>
    %13 = arith.addf %12, %11 : vector<1x10xf32>
    %14 = arith.divf %12, %13 : vector<1x10xf32>
    %c0_11 = arith.constant 0 : index
    %c0_12 = arith.constant 0 : index
    %15 = vector.load %arg6[%c0_11, %c0_12] : memref<1x10xf32, #tpu.memory_space<vmem>>, vector<1x10xf32>
    tpu.vector_store %arg6[%c0_11, %c0_12], %14 {strides = array<i32>} : memref<1x10xf32, #tpu.memory_space<vmem>>, vector<1x10xf32>,
    return
  }
  func.func @transform_0(%arg0: i32) -> (i32, i32) {
    %c0_i32 = arith.constant 0 : i32
    %c0_i32_0 = arith.constant 0 : i32
    return %arg0, %c0_i32 : i32, i32
  }
  func.func @transform_1(%arg0: i32) -> (i32, i32) {
    %c0_i32 = arith.constant 0 : i32
    %c0_i32_0 = arith.constant 0 : i32
    return %arg0, %c0_i32 : i32, i32
  }
  func.func @transform_2(%arg0: i32) -> (i32, i32) {
    %c0_i32 = arith.constant 0 : i32
    %c0_i32_0 = arith.constant 0 : i32
    %c0_i32_1 = arith.constant 0 : i32
    return %c0_i32, %c0_i32_0 : i32, i32
  }
  func.func @transform_3(%arg0: i32) -> (i32, i32) {
    %c0_i32 = arith.constant 0 : i32
    %c0_i32_0 = arith.constant 0 : i32
    %c0_i32_1 = arith.constant 0 : i32
    return %c0_i32, %c0_i32_0 : i32, i32
  }
  func.func @transform_4(%arg0: i32) -> (i32, i32) {
    %c0_i32 = arith.constant 0 : i32
    %c0_i32_0 = arith.constant 0 : i32
    %c0_i32_1 = arith.constant 0 : i32
    return %c0_i32, %c0_i32_0 : i32, i32
  }
  func.func @transform_5(%arg0: i32) -> (i32, i32) {
    %c0_i32 = arith.constant 0 : i32
    %c0_i32_0 = arith.constant 0 : i32
    return %c0_i32, %arg0 : i32, i32
  }
}

</mosaic_0001>

<bundles_post_ra>
// kernel: subgraph_discriminator.1
= control target key start
LH: loop header
LB: loop body
LE: loop exit
PB: predicated region body
PF: predicated region fallthrough
CT: control target
= control target key end

     0   :  { %11 = vsyncpa [#allocation4], 0  ;;  %s397_s0 = inlined_call_operand.vmem [shape: f32[10,16], index: 0, kind: input, shape index: {}]   ;;  %s398_s1 = inlined_call_operand.hbm [shape: f32[10,16], index: 1, kind: input, shape index: {}]   ;;  %s399_s2 = inlined_call_operand.vmem [shape: f32[1,16], index: 2, kind: input, shape index: {}]   ;;  %s400_s3 = inlined_call_operand.vmem [shape: f32[1,16], index: 3, kind: input, shape index: {}]   ;;  %s401_s4 = inlined_call_operand.<no memory space> [shape: f32[1,1], index: 4, kind: input, shape index: {}]   ;;  %s402_s5 = inlined_call_operand.hbm [shape: f32[1,10], index: 5, kind: output, shape index: {}]  }
   0x1   :  { %12 = vsyncpa [#allocation5], 0  ;;  %s321_s18 = smov [#allocation3]   ;;  %s273_s22 = scalar_lea.hbm %s398_s1, 256 }
   0x2   :  { %s20_s19 = sshll.u32 %s321_s18, 4  ;;  %p274_p0 = scmp.ne.s32.totalorder %s398_s1, %s273_s22  ;;  %s21_s19 = int_to_ptr.vmem [resolvable:$true] %s20_s19 }
   0x3   :  { %p277_p1 = scmp.lt.u32.totalorder %s273_s22, %s398_s1 }
   0x5   :  { %p279_p2 = pnand %p277_p1, %p274_p0 }
   0x7   :  { %282 = shalt.err (!%p279_p2)
}
   0x8   :  { %s283_s27 = scalar_lea.vmem %s21_s19, 256  ;;  %p288_p4 = scmp.lt.s32.totalorder %s21_s19, %s21_s19 }
   0x9   :  { %p284_p3 = scmp.ne.s32.totalorder %s21_s19, %s283_s27  ;;  %p289_p5 = scmp.lt.s32.totalorder %s283_s27, %s283_s27 }
   0xb   :  { %p290_p6 = por %p289_p5, %p288_p4 }
   0xd   :  { %p291_p7 = pnand %p290_p6, %p284_p3 }
   0xf   :  { %294 = shalt.err (!%p291_p7)
}
  0x10   :  { %s322_s28 = smov 128   ;;  %s323_s29 = smov 8  }
  0x11   :  { %26 = dma.hbm_to_vmem [thread:$0]  %s398_s1, 256, %s21_s19, [#allocation4], %s322_s28, %s322_s28, %s323_s29  }
  0x12   :  { %317 = dma.done.wait [#allocation4], 256  }
  0x13   :  { %318 = vsyncadd [#allocation4], 4294967040  ;;  %v324_v0 = vmov 0.0|0.0   ;;  %vm325_vm0 = vmmov 0   ;;  %v326_v1 = vmov 0.0   ;;  %vm42_vm1 = vcmask 130048  }
  0x14   :  { %254 = vmatprep.subr.bf16.mxu0 %v324_v0  ;;  %258 = vmatprep.subr.bf16.mxu1 %v324_v0  ;;  %vm256_vm2 = vmpackc.low %vm42_vm1, %vm42_vm1  ;;  %v38_v2 = vld [vmem:[#allocation3] sm:$0xff]  ;;  %v39_v3 = vld [vmem:[#allocation3 + $0x8] sm:$0x3]  ;;  %v202_v12 = vstv %s401_s4  ;;  %vm210_vm3 = vcmask 73728  }
  0x15   :  { %244 = vmatprep.mubr.msk.f32.mxu0 %vm325_vm0, %v326_v1  ;;  %251 = vmatprep.mubr.msk.f32.mxu1 %vm325_vm0, %v326_v1  ;;  %v36_v4 = vld [vmem:[%s397_s0] sm:$0xff]  ;;  %v255_v5 = vpack.c.bf16 %v39_v3, %v38_v2  ;;  %v37_v6 = vld [vmem:[%s397_s0 + $0x8] sm:$0x3]  ;;  %s327_s0 = smov [#allocation6]  }
  0x16   :  { %v259_v7 = vpack.c.bf16 %v37_v6, %v36_v4  ;;  %v41_v8 = vld [vmem:[%s400_s3] sm:$0x1]  ;;  %s218_s3 = sshll.u32 %s327_s0, 4  ;;  %s219_s3 = int_to_ptr.vmem [resolvable:$true] %s218_s3 }
  0x17   :  { %257 = vmatpush3.bf16.xpose.msk.msra.mxu0 %vm256_vm2, %v255_v5  ;;  %v40_v9 = vld [vmem:[%s399_s2] sm:$0x1]  ;;  %s295_s2 = scalar_lea.vmem %s219_s3, 16  ;;  %s299_s16 = scalar_lea.vmem %s219_s3, 32 }
  0x18   :  { %261 = vmatpush3.bf16.xpose.msk.msra.mxu1 %vm256_vm2, %v259_v7  ;;  %p296_p8 = scmp.ne.s32.totalorder %s219_s3, %s295_s2  ;;  %p300_p9 = scmp.lt.s32.totalorder %s219_s3, %s219_s3 }
  0x19   :  { %p301_p10 = scmp.lt.s32.totalorder %s299_s16, %s295_s2 }
  0x1b   :  { %p302_p11 = por %p301_p10, %p300_p9 }
  0x1d   :  { %p303_p12 = pnand %p302_p11, %p296_p8 }
  0x1e   :  { %245 = vmatmul.mubr.msk.f32.vlgmr.msra.gmra.mrb[0].mxu0 %vm42_vm1, %v41_v8 }
  0x1f   :  { %252 = vmatmul.mubr.msk.f32.vlgmr.msra.gmra.mrb[0].mxu1 %vm42_vm1, %v40_v9 }
  0xf1   :  { %v118_v10 = vpop.f32.mrb[0].mxu0 }
  0xf2   :  { %v197_v11 = vpop.f32.mrb[0].mxu1  ;;  %v246_v13 = vpop.f32.mrb[1].mxu0 }
  0xf3   :  { %v198_v14 = vadd.f32 %v197_v11, %v118_v10  ;;  %v253_v15 = vpop.f32.mrb[1].mxu1 }
  0xf5   :  { %v203_v16 = vadd.f32 %v202_v12, %v198_v14 }
  0xf7   :  { %v233_v17 = vmul.f32 -1.442695, %v203_v16 }
  0xf9   :  { %269 = vpow2.f32 %v233_v17 }
 0x103   :  { %v270_v18 = vpop.eup %269 }
 0x104   :  { %v207_v19 = vadd.f32 1.0, %v270_v18 }
 0x106   :  { %271 = vrcp.f32 %v207_v19 }
 0x110   :  { %v272_v20 = vpop.eup %271 }
 0x111   :  { %211 = vst.msk [vmem:[#allocation6] sm:$0x1] %vm210_vm3, %v272_v20 }
 0x112   :  { %306 = shalt.err (!%p303_p12)
}
 0x113   :  { %s307_s18 = scalar_lea.hbm %s402_s5, 16 }
 0x114   :  { %p308_p13 = scmp.ne.s32.totalorder %s402_s5, %s307_s18  ;;  %p311_p0 = scmp.lt.u32.totalorder %s307_s18, %s402_s5 }
 0x116   :  { %p313_p1 = pnand %p311_p0, %p308_p13 }
 0x118   :  { %316 = shalt.err (!%p313_p1)
}
 0x119   :  { %221 = dma.vmem_to_hbm [thread:$0]  %s219_s3, 16, %s402_s5, [#allocation5]  }
 0x11a   :  { %319 = dma.done.wait [#allocation5], 16  }
 0x11b   :  { %320 = vsyncadd [#allocation5], 4294967280 }
 0x11c   :  { %225 = vsyncpa [#allocation4], 1 }
 0x11d   :  { %226 = vsyncpa [#allocation5], 1 }

</bundles_post_ra>
